<compile_context>
chip_gen: v7x
topology: tpu7x:2x2x1
jax: 0.10.0
libtpu: 0.0.40
codegen_flags: <defaults>
</compile_context>

<pallas_src>
import functools

import jax
import jax.numpy as jnp
from jax.experimental import pallas as pl
from jax.experimental.pallas import tpu as pltpu

EPS = 1e-6
GAMMA = 0   # self.gamma in the torch module (power terms are identically 1)
ALPHA = 0   # self.alpha — unused by forward()

_TILE_N_CAP = 8192          # diminishing returns past a few thousand rows
_DEFAULT_VMEM_CAP = 64 * 1024 * 1024   # conservative: v7x per-TensorCore VMEM


def _tpu_vmem_capacity_bytes():
    """Best-effort per-core VMEM capacity; conservative fallback otherwise."""
    try:
        cap = int(getattr(pltpu.get_tpu_info(), "vmem_capacity_bytes", 0))
        if cap > 0:
            return cap
    except Exception:
        pass
    return _DEFAULT_VMEM_CAP


def _tpu_num_tensorcores():
    """Best-effort TensorCores-per-chip; 1 (v5e/v6e-safe) if unknown."""
    try:
        info = pltpu.get_tpu_info()
        for attr in ("num_cores", "num_tensorcores", "tensorcores_per_chip",
                     "cores_per_chip", "core_count"):
            v = getattr(info, attr, None)
            if v:
                return max(1, int(v))
    except Exception:
        pass
    return 1


def _partials_kernel(pred_ref, target_ref, part_ref, *, tile_n, tiles_per_split,
                     n_total, ragged, nonneg):
    """Accumulate packed per-(B, C) partial sums over the N tiles of this split."""
    n = pl.program_id(1)

    def partials(p, t):
        # gamma == 0: pred**0 == (1-pred)**0 == 1, so the focal factors vanish.
        temp = -(1.0 - t) * jnp.log(1.0 - p + EPS) - t * jnp.log(p + EPS)
        parts = [jnp.sum(temp, axis=1),        # (B, C) CE partial
                 jnp.sum(p * t, axis=1),       # (B, C) sum pred*target
                 jnp.sum(p + t, axis=1)]       # (B, C) sum pred + target
        if not nonneg:
            parts.append(jnp.sum(jnp.abs(p) + jnp.abs(t), axis=1))  # (B, C)
        return jnp.concatenate(parts, axis=0)[None]   # (1, P*B, C) — one block

    def accumulate(partial):
        @pl.when(n == 0)
        def _init():
            part_ref[...] = partial

        @pl.when(n > 0)
        def _acc():
            part_ref[...] += partial

    p = pred_ref[...].astype(jnp.float32)      # (B, tile_n, C)
    t = target_ref[...].astype(jnp.float32)

    if not ragged:
        accumulate(partials(p, t))
    else:
        # Only the global last tile can be ragged (splits are pad-free), so the
        # mask cost (iota + compares + selects) is paid by a single grid step.
        row0 = (pl.program_id(0) * tiles_per_split + n) * tile_n
        is_tail = (row0 + tile_n) > n_total

        @pl.when(jnp.logical_not(is_tail))
        def _full():
            accumulate(partials(p, t))

        @pl.when(is_tail)
        def _tail():
            rows = jax.lax.broadcasted_iota(jnp.int32, (1, tile_n, 1), 1)
            valid = (rows + row0) < n_total
            # Mask BEFORE the logs so OOB garbage can't produce NaN/Inf.
            accumulate(partials(jnp.where(valid, p, 0.0),
                                jnp.where(valid, t, 0.0)))


def estimation_loss(pred, target, *, tile_n=None, n_split=None,
                    assume_nonnegative=False):
    """pred, target: [B, N, C] arrays (pred in (0, 1)). Returns f32 scalar loss.

    Fast path: pass pred/target already in bfloat16 (halves HBM traffic; all
    accumulation is f32 in-kernel).  Set assume_nonnegative=True when pred>=0
    and target>=0 (e.g. sigmoid outputs / {0,1} labels) to drop the abs pass.
    """
    assert pred.shape == target.shape and pred.ndim == 3, (pred.shape, target.shape)
    B, N, C = pred.shape
    itemsize = max(jnp.dtype(pred.dtype).itemsize, jnp.dtype(target.dtype).itemsize)
    quantum = 8 * max(1, 4 // itemsize)        # sublane quantum for packed dtypes

    vmem_cap = _tpu_vmem_capacity_bytes()
    input_budget = vmem_cap // 4               # 2 inputs x 2 pipeline buffers
    vmem_limit = min(vmem_cap // 2, 128 * 1024 * 1024)

    # ---- pick the N-tile: biggest tile whose double-buffered input windows fit
    # the per-chip VMEM budget (no artificial small cap). ----
    if tile_n is None:
        bytes_per_row = 2 * 2 * B * C * itemsize       # 2 inputs x 2 buffers
        tile_n = max(quantum, input_budget // max(bytes_per_row, 1))
        tile_n = min(tile_n, _TILE_N_CAP)
    tile_n = int(min(tile_n, N))
    if tile_n != N:
        tile_n = min(max(quantum, (tile_n // quantum) * quantum), N)

    n_tiles = -(-N // tile_n)

    # ---- pad-free megacore split: n_split must divide n_tiles, default is the
    # detected TensorCore count (1 on single-TC v5e/v6e => zero overhead). ----
    if n_split is None:
        n_split = _tpu_num_tensorcores()
    n_split = max(1, min(int(n_split), n_tiles))
    while n_tiles % n_split:
        n_split -= 1
    tiles_per_split = n_tiles // n_split

    ragged = (n_tiles * tile_n) != N
    num_parts = 3 if assume_nonnegative else 4

    kernel = functools.partial(
        _partials_kernel, tile_n=tile_n, tiles_per_split=tiles_per_split,
        n_total=N, ragged=ragged, nonneg=assume_nonnegative)

    def in_index_map(s, n):
        return (0, s * tiles_per_split + n, 0)

    in_spec = pl.BlockSpec((B, tile_n, C), in_index_map)

    cost = pl.CostEstimate(
        flops=12 * B * N * C,
        transcendentals=2 * B * N * C,
        bytes_accessed=(pred.size * jnp.dtype(pred.dtype).itemsize
                        + target.size * jnp.dtype(target.dtype).itemsize
                        + n_split * num_parts * B * C * 4))

    parts = pl.pallas_call(
        kernel,
        grid=(n_split, tiles_per_split),
        in_specs=[in_spec, in_spec],
        out_specs=pl.BlockSpec((1, num_parts * B, C), lambda s, n: (s, 0, 0)),
        out_shape=jax.ShapeDtypeStruct((n_split, num_parts * B, C), jnp.float32),
        compiler_params=pltpu.CompilerParams(
            dimension_semantics=("parallel", "arbitrary"),
            vmem_limit_bytes=vmem_limit),
        cost_estimate=cost,
    )(pred, target)

    # ---- tiny finalize on the (B, C) partials (combines per-core splits) ----
    parts = parts.sum(axis=0).reshape(num_parts, B, C)
    ce_sum, s_pt, s_sum = parts[0], parts[1], parts[2]
    s_abs = s_sum if assume_nonnegative else parts[3]

    # CE = sum_C(mean_{B,N}(temp)) == sum(temp) / (B*N)
    ce_loss = jnp.sum(ce_sum) / jnp.float32(B * N)

    n_f = jnp.float32(N)
    dice_pos = (s_pt + EPS) / (s_abs + EPS)              # (inter_pos+eps)/(card_pos+eps)
    inter_neg = n_f - s_sum + s_pt                       # sum_N (1-p)(1-t)
    card_neg = 2.0 * n_f - s_abs                         # sum_N (2 - |p| - |t|)
    dice_neg = (inter_neg + EPS) / (card_neg + EPS)
    dice_loss = jnp.sum(jnp.mean(1.5 - dice_pos - dice_neg, axis=0))

    return ce_loss + 1.0 * dice_loss


def estimation_loss_ref(pred, target):
    """Pure-JAX reference mirroring the PyTorch forward exactly."""
    pred = pred.astype(jnp.float32)
    target = target.astype(jnp.float32)
    temp1 = -(pred ** GAMMA) * ((1.0 - target) * jnp.log(1.0 - pred + EPS))
    temp2 = -((1.0 - pred) ** GAMMA) * (target * jnp.log(pred + EPS))
    temp = temp1 + temp2
    ce = jnp.sum(jnp.mean(temp, axis=(0, 1)))
    ip = jnp.sum(pred * target, axis=1)
    cp = jnp.sum(jnp.abs(pred) + jnp.abs(target), axis=1)
    dp = (ip + EPS) / (cp + EPS)
    inn = jnp.sum((1.0 - pred) * (1.0 - target), axis=1)
    cn = jnp.sum(2.0 - jnp.abs(pred) - jnp.abs(target), axis=1)
    dn = (inn + EPS) / (cn + EPS)
    dice = jnp.sum(jnp.mean(1.5 - dp - dn, axis=0))
    return ce + 1.0 * dice


if __name__ == "__main__":
    key = jax.random.PRNGKey(0)
    k1, k2, k3, k4 = jax.random.split(key, 4)

    # Demo shape [B, N, C] = [2, 256, 128]; force a (2 splits x 2 tiles) grid to
    # exercise the parallel split + pipelined accumulation path.
    B, N, C = 2, 256, 128
    pred = jax.nn.sigmoid(jax.random.normal(k1, (B, N, C), dtype=jnp.float32))
    target = (jax.random.uniform(k2, (B, N, C)) > 0.5).astype(jnp.float32)

    ref = jax.block_until_ready(estimation_loss_ref(pred, target))

    out = jax.block_until_ready(estimation_loss(pred, target, tile_n=64, n_split=2))
    assert jnp.allclose(out, ref, rtol=1e-5, atol=1e-5), (out, ref)

    # Default (auto) tiling / auto split on the same inputs.
    out_auto = jax.block_until_ready(estimation_loss(pred, target))
    assert jnp.allclose(out_auto, ref, rtol=1e-5, atol=1e-5), (out_auto, ref)

    # assume_nonnegative fast path (valid here: sigmoid pred, {0,1} target).
    out_nn = jax.block_until_ready(
        estimation_loss(pred, target, assume_nonnegative=True))
    assert jnp.allclose(out_nn, ref, rtol=1e-5, atol=1e-5), (out_nn, ref)

    # Ragged N (exercises the pl.when-gated tail mask) with bf16 inputs
    # (the documented halved-HBM fast path).
    Br, Nr, Cr = 2, 100, 128
    pred_r = jax.nn.sigmoid(
        jax.random.normal(k3, (Br, Nr, Cr), dtype=jnp.float32)).astype(jnp.bfloat16)
    target_r = (jax.random.uniform(k4, (Br, Nr, Cr)) > 0.5).astype(jnp.bfloat16)
    out_r = jax.block_until_ready(estimation_loss(pred_r, target_r, tile_n=64))
    ref_r = jax.block_until_ready(estimation_loss_ref(pred_r, target_r))
    assert jnp.allclose(out_r, ref_r, rtol=1e-5, atol=1e-5), (out_r, ref_r)

    print("KERNEL_OK")
</pallas_src>

<mosaic_0001>
module attributes {stable_mosaic.version = 11 : i64} {
  func.func @_partials_kernel(%arg0: i32, %arg1: i32, %arg2: memref<2x64x128xf32, #tpu.memory_space<vmem>>, %arg3: memref<2x64x128xf32, #tpu.memory_space<vmem>>, %arg4: memref<1x8x128xf32, #tpu.memory_space<vmem>>) attributes {dimension_semantics = [#tpu.dimension_semantics<parallel>, #tpu.dimension_semantics<arbitrary>], iteration_bounds = array<i64: 2, 2>, scalar_prefetch = 0 : i64, scratch_operands = 0 : i64, tpu.core_type = #tpu.core_type<tc>, window_params = [{transform_indices = @transform_0, window_bounds = array<i64: 2, 64, 128>}, {transform_indices = @transform_1, window_bounds = array<i64: 2, 64, 128>}, {transform_indices = @transform_2, window_bounds = array<i64: 1, 8, 128>}]} {
    %c0 = arith.constant 0 : index
    %c0_0 = arith.constant 0 : index
    %c0_1 = arith.constant 0 : index
    %0 = vector.load %arg2[%c0, %c0_0, %c0_1] : memref<2x64x128xf32, #tpu.memory_space<vmem>>, vector<2x64x128xf32>
    %c0_2 = arith.constant 0 : index
    %c0_3 = arith.constant 0 : index
    %c0_4 = arith.constant 0 : index
    %1 = vector.load %arg3[%c0_2, %c0_3, %c0_4] : memref<2x64x128xf32, #tpu.memory_space<vmem>>, vector<2x64x128xf32>
    %cst = arith.constant 1.000000e+00 : f32
    %2 = vector.broadcast %cst : f32 to vector<2x64x128xf32>
    %3 = arith.subf %2, %1 : vector<2x64x128xf32>
    %cst_5 = arith.constant 0.000000e+00 : f32
    %4 = vector.broadcast %cst_5 : f32 to vector<2x64x128xf32>
    %5 = arith.subf %4, %3 : vector<2x64x128xf32>
    %cst_6 = arith.constant 1.000000e+00 : f32
    %6 = vector.broadcast %cst_6 : f32 to vector<2x64x128xf32>
    %7 = arith.subf %6, %0 : vector<2x64x128xf32>
    %cst_7 = arith.constant 9.99999997E-7 : f32
    %8 = vector.broadcast %cst_7 : f32 to vector<2x64x128xf32>
    %9 = arith.addf %7, %8 : vector<2x64x128xf32>
    %10 = math.log %9 : vector<2x64x128xf32>
    %11 = arith.mulf %5, %10 : vector<2x64x128xf32>
    %cst_8 = arith.constant 9.99999997E-7 : f32
    %12 = vector.broadcast %cst_8 : f32 to vector<2x64x128xf32>
    %13 = arith.addf %0, %12 : vector<2x64x128xf32>
    %14 = math.log %13 : vector<2x64x128xf32>
    %15 = arith.mulf %1, %14 : vector<2x64x128xf32>
    %16 = arith.subf %11, %15 : vector<2x64x128xf32>
    %cst_9 = arith.constant dense<0.000000e+00> : vector<2x128xf32>
    %17 = vector.multi_reduction <add>, %16, %cst_9 [1] : vector<2x64x128xf32> to vector<2x128xf32>
    %18 = arith.mulf %0, %1 : vector<2x64x128xf32>
    %cst_10 = arith.constant dense<0.000000e+00> : vector<2x128xf32>
    %19 = vector.multi_reduction <add>, %18, %cst_10 [1] : vector<2x64x128xf32> to vector<2x128xf32>
    %20 = arith.addf %0, %1 : vector<2x64x128xf32>
    %cst_11 = arith.constant dense<0.000000e+00> : vector<2x128xf32>
    %21 = vector.multi_reduction <add>, %20, %cst_11 [1] : vector<2x64x128xf32> to vector<2x128xf32>
    %22 = math.absf %0 : vector<2x64x128xf32>
    %23 = math.absf %1 : vector<2x64x128xf32>
    %24 = arith.addf %22, %23 : vector<2x64x128xf32>
    %cst_12 = arith.constant dense<0.000000e+00> : vector<2x128xf32>
    %25 = vector.multi_reduction <add>, %24, %cst_12 [1] : vector<2x64x128xf32> to vector<2x128xf32>
    %26 = tpu.concatenate %17, %19, %21, %25 in 0 : vector<2x128xf32>, vector<2x128xf32>, vector<2x128xf32>, vector<2x128xf32> -> vector<8x128xf32>
    %27 = vector.shape_cast %26 : vector<8x128xf32> to vector<1x8x128xf32>
    %c0_i32 = arith.constant 0 : i32
    %28 = arith.cmpi eq, %arg1, %c0_i32 : i32
    %29 = arith.extui %28 : i1 to i32
    %c0_i32_13 = arith.constant 0 : i32
    %30 = arith.cmpi ne, %29, %c0_i32_13 : i32
    scf.if %30 {
      %c0_16 = arith.constant 0 : index
      %c0_17 = arith.constant 0 : index
      %c0_18 = arith.constant 0 : index
      %34 = vector.load %arg4[%c0_16, %c0_17, %c0_18] : memref<1x8x128xf32, #tpu.memory_space<vmem>>, vector<1x8x128xf32>
      tpu.vector_store %arg4[%c0_16, %c0_17, %c0_18], %27 {strides = array<i32>} : memref<1x8x128xf32, #tpu.memory_space<vmem>>, vector<1x8x128xf32>,
    } else {
    }
    %c0_i32_14 = arith.constant 0 : i32
    %31 = arith.cmpi sgt, %arg1, %c0_i32_14 : i32
    %32 = arith.extui %31 : i1 to i32
    %c0_i32_15 = arith.constant 0 : i32
    %33 = arith.cmpi ne, %32, %c0_i32_15 : i32
    scf.if %33 {
      %c0_16 = arith.constant 0 : index
      %c0_17 = arith.constant 0 : index
      %c0_18 = arith.constant 0 : index
      %34 = vector.load %arg4[%c0_16, %c0_17, %c0_18] : memref<1x8x128xf32, #tpu.memory_space<vmem>>, vector<1x8x128xf32>
      %35 = arith.addf %34, %27 : vector<1x8x128xf32>
      %c0_19 = arith.constant 0 : index
      %c0_20 = arith.constant 0 : index
      %c0_21 = arith.constant 0 : index
      %36 = vector.load %arg4[%c0_19, %c0_20, %c0_21] : memref<1x8x128xf32, #tpu.memory_space<vmem>>, vector<1x8x128xf32>
      tpu.vector_store %arg4[%c0_19, %c0_20, %c0_21], %35 {strides = array<i32>} : memref<1x8x128xf32, #tpu.memory_space<vmem>>, vector<1x8x128xf32>,
    } else {
    }
    return
  }
  func.func @transform_0(%arg0: i32, %arg1: i32) -> (i32, i32, i32) {
    %c2_i32 = arith.constant 2 : i32
    %0 = arith.muli %arg0, %c2_i32 : i32
    %1 = arith.addi %0, %arg1 : i32
    %c0_i32 = arith.constant 0 : i32
    %c0_i32_0 = arith.constant 0 : i32
    %c0_i32_1 = arith.constant 0 : i32
    return %c0_i32, %1, %c0_i32_0 : i32, i32, i32
  }
  func.func @transform_1(%arg0: i32, %arg1: i32) -> (i32, i32, i32) {
    %c2_i32 = arith.constant 2 : i32
    %0 = arith.muli %arg0, %c2_i32 : i32
    %1 = arith.addi %0, %arg1 : i32
    %c0_i32 = arith.constant 0 : i32
    %c0_i32_0 = arith.constant 0 : i32
    %c0_i32_1 = arith.constant 0 : i32
    return %c0_i32, %1, %c0_i32_0 : i32, i32, i32
  }
  func.func @transform_2(%arg0: i32, %arg1: i32) -> (i32, i32, i32) {
    %c0_i32 = arith.constant 0 : i32
    %c0_i32_0 = arith.constant 0 : i32
    %c0_i32_1 = arith.constant 0 : i32
    return %arg0, %c0_i32, %c0_i32_0 : i32, i32, i32
  }
}

</mosaic_0001>

<bundles_post_ra>
// kernel: tpu_custom_call.1
= control target key start
LH: loop header
LB: loop body
LE: loop exit
PB: predicated region body
PF: predicated region fallthrough
CT: control target
= control target key end

     0   :  { %7 = vsyncpa [#allocation3], 0  ;;  %s1829_s0 = inlined_call_operand.hbm [shape: f32[2,256,128], index: 0, kind: input, shape index: {}]   ;;  %s1830_s1 = inlined_call_operand.hbm [shape: f32[2,256,128], index: 1, kind: input, shape index: {}]   ;;  %s1831_s2 = inlined_call_operand.hbm [shape: f32[2,8,128], index: 2, kind: output, shape index: {}]  }
   0x1   :  { %9 = vsyncpa [#allocation3 + $0x1], 0 }
   0x2   :  { %10 = vsyncpa [#allocation6], 0 }
   0x3   :  { %12 = vsyncpa [#allocation6 + $0x1], 0 }
   0x4   :  { %13 = vsyncpa [#allocation4], 0 }
   0x5   :  { %15 = vsyncpa [#allocation4 + $0x1], 0  ;;  %s1223_s9 = smov 0   ;;  %s1225_s10 = smov 0  }
   0x6   :  { %s1227_s11 = smov 0   ;;  %s1229_s12 = smov 0  }
   0x7   :  { %s1231_s13 = smov 0   ;;  %s1233_s14 = smov 0  }
   0x8   :  { %s1235_s15 = smov 0   ;;  %s1237_s16 = smov 0  }
   0x9   :  { %s1239_s17 = smov 0   ;;  %s1241_s18 = smov 0  }
   0xa   :  { %s1243_s19 = smov 0  }
   0xb LB: > { %1884 = sst [smem:[#allocation17_spill]] %s1187_s17  ;;  %s850_s20 = sadd.s32 4294967295, %s1195_s19   ;;  %s1195_s19 = sphi %s1243_s19, %s21_s19   ;;  %s1191_s18 = sphi %s1241_s18, %s1966_s18   ;;  %s1187_s17 = sphi %s1239_s17, %s1965_s17   ;;  %s1183_s16 = sphi %s1237_s16, %s1964_s16   ;;  %s1179_s15 = sphi %s1235_s15, %s1963_s15   ;;  %s1175_s14 = sphi %s1233_s14, %s1972_s14   ;;  %s1171_s13 = sphi %s1231_s13, %s1971_s13   ;;  %s1167_s12 = sphi %s1229_s12, %s1970_s12   ;;  %s1163_s11 = sphi %s1227_s11, %s1969_s11   ;;  %s1159_s10 = sphi %s1225_s10, %s1968_s10   ;;  %s1155_s9 = sphi %s1223_s9, %s1967_s9  }
   0xc   : > { %1885 = sst [smem:[#allocation18_spill]] %s1191_s18  ;;  %s851_s21 = sadd.s32 4294967294, %s1195_s19  }
   0xd   : > { %s30_s22 = sadd.s32 1, %s1187_s17  ;;  %s33_s23 = sadd.s32 1, %s1191_s18 }
   0xe   : > { %p31_p0 = scmp.ge.s32.totalorder %s30_s22, 2  ;;  %s852_s24 = sshll.u32 %s1191_s18, 1 }
   0xf   : > { %s1282_s25 = sadd.s32 %s1187_s17, %s852_s24  ;;  %s44_s26 = sadd.s32 1, %s1175_s14 }
  0x10   : > { %s1974_s22 = smov (%p31_p0, %s30_s22), 0  ;;  %s1976_s23 = smov (!%p31_p0, %s33_s23), %s1191_s18 }
  0x11   : > { %1886 = sst [smem:[#allocation19_spill]] %s1974_s22  ;;  %p51_p1 = scmp.ne.s32.totalorder %s1175_s14, %s1171_s13 }
  0x12   : > { %p52_p2 = scmp.eq.s32.totalorder %s1195_s19, 0  ;;  %p35_p3 = scmp.ge.s32.totalorder %s1976_s23, 2 }
  0x13   : > { %p57_p4 = scmp.ne.s32.totalorder %s1171_s13, %s1167_s12  ;;  %p58_p6 = scmp.eq.s32.totalorder %s850_s20, 0 }
  0x14   : > { %p1292_p5 = por %p52_p2, %p51_p1  ;;  %s1978_s23 = smov (%p35_p3, %s1976_s23), 0 }
  0x15   : > { %1888 = sst [smem:[#allocation20_spill]] %s1978_s23  ;;  %p1298_p7 = por %p58_p6, %p57_p4 }
  0x16   : > { %s100_s29 = sadd.s32 1, %s1163_s11  ;;  %s853_s30 = sshll.u32 %s1978_s23, 1 }
  0x17   : > { %s97_s3 = ssub.s32 %s1191_s18, %s1978_s23  ;;  %s40_s4 = sadd.s32 %s853_s30, %s1974_s22 }
  0x18   : > { %p98_p8 = scmp.eq.s32.totalorder %s97_s3, 0  ;;  %s41_s5 = ssub.s32 %s1282_s25, %s40_s4 }
  0x19   : > { %p110_p9 = scmp.ne.s32.totalorder %s1163_s11, %s1159_s10  ;;  %p42_p10 = scmp.eq.s32.totalorder %s41_s5, 0 }
  0x1a   : > { %p111_p11 = scmp.eq.s32.totalorder %s850_s20, 3  ;;  %p116_p13 = scmp.ne.s32.totalorder %s1159_s10, %s1155_s9 }
  0x1b   : > { %s1311_s6 = scalar_select %p98_p8, %s1163_s11, %s100_s29  }
  0x1c   : > { %s1314_s7 = scalar_select %p42_p10, %s1175_s14, %s44_s26  }
  0x1d   : > { %p1316_p12 = por %p111_p11, %p110_p9  ;;  %p117_p0 = scmp.eq.s32.totalorder %s851_s21, 3 }
  0x1e   : > { %1890 = sst [smem:[#allocation21_spill]] %s1314_s7  ;;  %p857_p2 = scmp.ge.s32.totalorder %s1195_s19, 4 }
  0x1f   : > { %p1324_p1 = por %p117_p0, %p116_p13 }
  0x20   : > { %133 = sbr.rel (%p857_p2) target bundleno = 63 (0x3f), region = 16 }
  0x27   : > { %s1330_s20 = sand.u32 1, %s1175_s14   ;;  %s880_s21 = sshll.u32 %s1282_s25, 10 }
  0x28   : > { %s858_s24 = sshll.u32 %s1330_s20, 7  ;;  %s149_s3 = scalar_lea.hbm %s1829_s0, %s880_s21 }
  0x29   : > { %s882_s26 = scalar_select %p1292_p5, [#allocation0], [#allocation12] }
  0x2a   : > { %s141_s5 = scalar_lea.vmem [#allocation2], %s858_s24  ;;  %s1197_s22 = smov 4096  }
  0x2b   : > { %s154_s4 = sld [smem:[%s882_s26]]   ;;  %s162_s23 = sshll.u32 %s141_s5, 4  ;;  %s163_s23 = int_to_ptr.vmem [resolvable:$true] %s162_s23 }
  0x2c   : > { %883 = sst [smem:[#allocation9]] (%p1292_p5), %s1197_s22  ;;  %s1198_s18 = smov 1024  }
  0x2d   : > { %884 = sst [smem:[#allocation9 + $0x1]] (%p1292_p5), %s1198_s18  ;;  %s1199_s17 = smov 8  }
  0x2e   : > { %885 = sst [smem:[#allocation9 + $0x2]] (%p1292_p5), %s1199_s17  ;;  %s1200_s7 = smov 128  }
  0x2f   : > { %886 = sst [smem:[#allocation9 + $0x3]] (%p1292_p5), %s1200_s7  ;;  %s138_s30 = scalar_lea.sflag [#allocation3], %s1330_s20 }
  0x30   : > { %887 = sst [smem:[#allocation9 + $0x4]] (%p1292_p5), %s1200_s7  ;;  %s1201_s5 = smov [#allocation8]  }
  0x31   : > { %s862_s26 = sshll.u32 %s154_s4, 26  ;;  %888 = sst [smem:[#allocation9 + $0x5]] (%p1292_p5), %s1199_s17 }
  0x32   : > { %s863_s29 = sadd.s32 134217728, %s862_s26 }
  0x33   : > { %889 = dma.general (%p1292_p5), %s149_s3, 2048, %s163_s23, %s138_s30, %s1201_s5, [#allocation9], %s863_s29, 0  }
  0x34   : > { %s890_s18 = scalar_select %p1292_p5, [#allocation0], [#allocation13] }
  0x35   : > { %s189_s22 = scalar_lea.vmem [#allocation5], %s858_s24  ;;  %s1202_s17 = smov 4096  }
  0x36   : > { %s210_s7 = sshll.u32 %s189_s22, 4  ;;  %s202_s4 = sld [smem:[%s890_s18]]   ;;  %s211_s7 = int_to_ptr.vmem [resolvable:$true] %s210_s7 }
  0x37   : > { %891 = sst [smem:[#allocation11]] (%p1292_p5), %s1202_s17  ;;  %s1203_s26 = smov 1024  }
  0x38   : > { %892 = sst [smem:[#allocation11 + $0x1]] (%p1292_p5), %s1203_s26  ;;  %s197_s29 = scalar_lea.hbm %s1830_s1, %s880_s21 }
  0x39   : > { %s1204_s30 = smov 8   ;;  %s1205_s24 = smov 128  }
  0x3a   : > { %893 = sst [smem:[#allocation11 + $0x2]] (%p1292_p5), %s1204_s30  ;;  %s186_s22 = scalar_lea.sflag [#allocation6], %s1330_s20 }
  0x3b   : > { %894 = sst [smem:[#allocation11 + $0x3]] (%p1292_p5), %s1205_s24  ;;  %s1206_s17 = smov [#allocation10]  }
  0x3c   : > { %895 = sst [smem:[#allocation11 + $0x4]] (%p1292_p5), %s1205_s24  ;;  %s868_s5 = sshll.u32 %s202_s4, 26 }
  0x3d   : > { %896 = sst [smem:[#allocation11 + $0x5]] (%p1292_p5), %s1204_s30  ;;  %s869_s18 = sadd.s32 134217728, %s868_s5 }
  0x3e   : > { %897 = dma.general (%p1292_p5), %s197_s29, 2048, %s211_s7, %s186_s22, %s1206_s17, [#allocation11], %s869_s18, 0  }
  0x3f PF: > { %p870_p3 = scmp.ge.s32.totalorder %s1195_s19, 1  ;;  %p231_p4 = scmp.lt.s32.totalorder %s1195_s19, 5 }
  0x41   : > { %p232_p6 = pnand %p870_p3, %p231_p4 }
  0x43   : > { %235 = sbr.rel (%p232_p6) target bundleno = 230 (0xe6), region = 28 }
  0x4a   : > { %s237_s25 = sand.u32 1, %s1171_s13  }
  0x4b   : > { %s871_s21 = sshll.u32 %s237_s25, 7  ;;  %s238_s26 = scalar_lea.sflag [#allocation3], %s237_s25 }
  0x4c   : > { %s241_s4 = scalar_lea.vmem [#allocation2], %s871_s21 }
  0x4d   : > { %1142 = dma.done.wait (%p1298_p7), %s238_s26, 2048  }
  0x4e   : > { %1144 = vsyncadd (%p1298_p7), %s238_s26, 4294965248  ;;  %s247_s27 = scalar_lea.sflag [#allocation6], %s237_s25  ;;  %s1385_s20 = scalar_lea.vmem [#allocation5], %s871_s21 }
  0x4f   : > { %1146 = dma.done.wait (%p1298_p7), %s247_s27, 2048  }
  0x50   : > { %1148 = vsyncadd (%p1298_p7), %s247_s27, 4294965248  ;;  %s273_s7 = sand.u32 1, %s1159_s10   ;;  %v1396_v0 = vld [vmem:[%s241_s4] sm:$0xff]  ;;  %v1398_v1 = vld [vmem:[%s241_s4 + $0x8] sm:$0xff]  ;;  %vm692_vm0 = vcmask 1041409   ;;  %vm697_vm1 = vcmask 1043459  }
  0x51   : > { %s1394_s23 = sshll.u32 %s273_s7, 3  ;;  %1893 = vst [vmem:[#allocation22_spill] sm:$0xff] %v1396_v0  ;;  %1894 = vst [vmem:[#allocation23_spill] sm:$0xff] %v1398_v1  ;;  %v1400_v2 = vld [vmem:[%s241_s4 + $0x10] sm:$0xff]  ;;  %v1402_v3 = vld [vmem:[%s241_s4 + $0x18] sm:$0xff]  ;;  %v346_v13 = vsub.f32 1.0, %v1396_v0 }
  0x52   : > { %1895 = vst [vmem:[#allocation24_spill] sm:$0xff] %v1400_v2  ;;  %1896 = vst [vmem:[#allocation25_spill] sm:$0xff] %v1402_v3  ;;  %v1404_v4 = vld [vmem:[%s241_s4 + $0x20] sm:$0xff]  ;;  %v1406_v5 = vld [vmem:[%s241_s4 + $0x28] sm:$0xff]  ;;  %v347_v14 = vsub.f32 1.0, %v1398_v1  ;;  %v348_v15 = vsub.f32 1.0, %v1400_v2 }
  0x53   : > { %1897 = vst [vmem:[#allocation26_spill] sm:$0xff] %v1404_v4  ;;  %1898 = vst [vmem:[#allocation27_spill] sm:$0xff] %v1406_v5  ;;  %v1408_v6 = vld [vmem:[%s241_s4 + $0x30] sm:$0xff]  ;;  %v1410_v7 = vld [vmem:[%s241_s4 + $0x38] sm:$0xff]  ;;  %v349_v19 = vsub.f32 1.0, %v1402_v3  ;;  %v350_v20 = vsub.f32 1.0, %v1404_v4 }
  0x54   : > { %1899 = vst [vmem:[#allocation28_spill] sm:$0xff] %v1408_v6  ;;  %1900 = vst [vmem:[#allocation29_spill] sm:$0xff] %v1410_v7  ;;  %v1412_v8 = vld [vmem:[%s241_s4 + $0x40] sm:$0xff]  ;;  %v1414_v9 = vld [vmem:[%s241_s4 + $0x48] sm:$0xff]  ;;  %v351_v21 = vsub.f32 1.0, %v1406_v5  ;;  %v352_v25 = vsub.f32 1.0, %v1408_v6 }
  0x55   : > { %1901 = vst [vmem:[#allocation30_spill] sm:$0xff] %v1412_v8  ;;  %1902 = vst [vmem:[#allocation31_spill] sm:$0xff] %v1414_v9  ;;  %v1416_v10 = vld [vmem:[%s241_s4 + $0x50] sm:$0xff]  ;;  %v1418_v11 = vld [vmem:[%s241_s4 + $0x58] sm:$0xff]  ;;  %v353_v26 = vsub.f32 1.0, %v1410_v7  ;;  %v354_v27 = vsub.f32 1.0, %v1412_v8 }
  0x56   : > { %1903 = vst [vmem:[#allocation32_spill] sm:$0xff] %v1416_v10  ;;  %v1420_v12 = vld [vmem:[%s241_s4 + $0x60] sm:$0xff]  ;;  %v1425_v16 = vld [vmem:[%s241_s4 + $0x68] sm:$0xff]  ;;  %v1427_v17 = vld [vmem:[%s241_s4 + $0x70] sm:$0xff]  ;;  %v355_v31 = vsub.f32 1.0, %v1414_v9  ;;  %v356_v32 = vsub.f32 1.0, %v1416_v10 }
  0x57   : > { %1904 = vst [vmem:[#allocation33_spill] sm:$0xff] %v1425_v16  ;;  %1905 = vst [vmem:[#allocation34_spill] sm:$0xff] %v1427_v17  ;;  %v1429_v18 = vld [vmem:[%s241_s4 + $0x78] sm:$0xff]  ;;  %v1435_v22 = vld [vmem:[%s1385_s20] sm:$0xff]  ;;  %v362_v59 = vadd.f32 1e-06, %v346_v13 }
  0x58   : > { %1906 = vst [vmem:[#allocation35_spill] sm:$0xff] %v1429_v18  ;;  %1907 = vst [vmem:[#allocation36_spill] sm:$0xff] %v1435_v22  ;;  %v1438_v23 = vld [vmem:[%s1385_s20 + $0x8] sm:$0xff]  ;;  %v1441_v24 = vld [vmem:[%s1385_s20 + $0x10] sm:$0xff]  ;;  %v314_v42 = vsub.f32 1.0, %v1435_v22  ;;  %v1481_v45 = vmul.f32 %v1435_v22, %v1396_v0  ;;  %vm702_vm2 = vcmask 1045509  }
  0x59   : > { %1908 = vst [vmem:[#allocation37_spill] sm:$0xff] %v1438_v23  ;;  %1909 = vst [vmem:[#allocation38_spill] sm:$0xff] %v1441_v24  ;;  %v1447_v28 = vld [vmem:[%s1385_s20 + $0x18] sm:$0xff]  ;;  %v1450_v29 = vld [vmem:[%s1385_s20 + $0x20] sm:$0xff]  ;;  %v315_v43 = vsub.f32 1.0, %v1438_v23  ;;  %v316_v46 = vsub.f32 1.0, %v1441_v24  ;;  %v1501_v56 = vmul.f32 %v1438_v23, %v1398_v1  ;;  %v1513_v39 = vmul.f32 %v1441_v24, %v1400_v2 }
  0x5a   : > { %1910 = vst [vmem:[#allocation39_spill] sm:$0xff] %v1447_v28  ;;  %v1453_v30 = vld [vmem:[%s1385_s20 + $0x28] sm:$0xff]  ;;  %v1459_v34 = vld [vmem:[%s1385_s20 + $0x30] sm:$0xff]  ;;  %v1462_v35 = vld [vmem:[%s1385_s20 + $0x38] sm:$0xff]  ;;  %v317_v47 = vsub.f32 1.0, %v1447_v28  ;;  %v318_v48 = vsub.f32 1.0, %v1450_v29  ;;  %v1517_v38 = vmul.f32 %v1447_v28, %v1402_v3  ;;  %1005 = vlog2.f32 %v362_v59 }
  0x5b   : > { %1911 = vst [vmem:[#allocation40_spill] sm:$0xff] %v1453_v30  ;;  %1912 = vst [vmem:[#allocation41_spill] sm:$0xff] %v1459_v34  ;;  %v1465_v36 = vld [vmem:[%s1385_s20 + $0x40] sm:$0xff]  ;;  %v1471_v40 = vld [vmem:[%s1385_s20 + $0x48] sm:$0xff]  ;;  %v319_v49 = vsub.f32 1.0, %v1453_v30  ;;  %v320_v53 = vsub.f32 1.0, %v1459_v34 }
  0x5c   : > { %1913 = vst [vmem:[#allocation42_spill] sm:$0xff] %v1462_v35  ;;  %1914 = vst [vmem:[#allocation43_spill] sm:$0xff] %v1465_v36  ;;  %v1474_v41 = vld [vmem:[%s1385_s20 + $0x50] sm:$0xff]  ;;  %v1488_v50 = vld [vmem:[%s1385_s20 + $0x58] sm:$0xff]  ;;  %v321_v54 = vsub.f32 1.0, %v1462_v35  ;;  %v322_v55 = vsub.f32 1.0, %v1465_v36 }
  0x5d   : > { %1915 = vst [vmem:[#allocation44_spill] sm:$0xff] %v1471_v40  ;;  %1916 = vst [vmem:[#allocation45_spill] sm:$0xff] %v1474_v41  ;;  %v1491_v51 = vld [vmem:[%s1385_s20 + $0x60] sm:$0xff]  ;;  %v1494_v52 = vld [vmem:[%s1385_s20 + $0x68] sm:$0xff]  ;;  %v323_v57 = vsub.f32 1.0, %v1471_v40  ;;  %v324_v58 = vsub.f32 1.0, %v1474_v41 }
  0x5e   : > { %v363_v60 = vadd.f32 1e-06, %v347_v14  ;;  %v1506_v61 = vld [vmem:[%s1385_s20 + $0x70] sm:$0xff]  ;;  %v1509_v62 = vld [vmem:[%s1385_s20 + $0x78] sm:$0xff]  ;;  %v364_v63 = vadd.f32 1e-06, %v348_v15 }
  0x5f   : > { %v365_v44 = vadd.f32 1e-06, %v349_v19  ;;  %1917 = vst [vmem:[#allocation46_spill] sm:$0xff] %v1513_v39  ;;  %1918 = vst [vmem:[#allocation47_spill] sm:$0xff] %v1517_v38  ;;  %v325_v37 = vsub.f32 1.0, %v1488_v50  ;;  %v326_v33 = vsub.f32 1.0, %v1491_v51 }
  0x60   : > { %v366_v13 = vadd.f32 1e-06, %v350_v20  ;;  %v327_v14 = vsub.f32 1.0, %v1494_v52  ;;  %v1522_v23 = vsub.f32 0.0, %v314_v42  ;;  %v367_v15 = vadd.f32 1e-06, %v351_v21 }
  0x61   : > { %1007 = vlog2.f32 %v363_v60  ;;  %v328_v19 = vsub.f32 1.0, %v1506_v61  ;;  %v329_v24 = vsub.f32 1.0, %v1509_v62  ;;  %v368_v22 = vadd.f32 1e-06, %v352_v25  ;;  %s275_s28 = scalar_lea.vmem [#allocation7], %s1394_s23  ;;  %p874_p5 = scmp.ne.s32.totalorder %s1179_s15, 0 }
  0x62   : > { %1919 = vst [vmem:[#allocation48_spill] sm:$0xff] %v1522_v23  ;;  %1009 = vlog2.f32 %v364_v63  ;;  %v1526_v28 = vsub.f32 0.0, %v315_v43  ;;  %v1528_v38 = vsub.f32 0.0, %v316_v46  ;;  %v369_v39 = vadd.f32 1e-06, %v353_v26 }
  0x63   : > { %1011 = vlog2.f32 %v365_v44  ;;  %v1530_v20 = vsub.f32 0.0, %v317_v47  ;;  %v1532_v59 = vsub.f32 0.0, %v318_v48  ;;  %v370_v42 = vadd.f32 1e-06, %v354_v27 }
  0x64   : > { %1013 = vlog2.f32 %v366_v13  ;;  %v1534_v21 = vsub.f32 0.0, %v319_v49  ;;  %v1536_v60 = vsub.f32 0.0, %v320_v53  ;;  %v371_v23 = vadd.f32 1e-06, %v355_v31 }
  0x65   : > { %1015 = vlog2.f32 %v367_v15  ;;  %v1538_v25 = vsub.f32 0.0, %v321_v54  ;;  %v1540_v43 = vsub.f32 0.0, %v322_v55  ;;  %v372_v46 = vadd.f32 1e-06, %v356_v32 }
  0x66   : > { %1017 = vlog2.f32 %v368_v22  ;;  %v1542_v26 = vsub.f32 0.0, %v323_v57  ;;  %v1544_v44 = vsub.f32 0.0, %v324_v58  ;;  %v1921_v47 = vsub.f32 1.0, %v1418_v11  ;;  %v1006_v57 = vpop.eup %1005 }
  0x67   : > { %1920 = vst [vmem:[#allocation49_spill] sm:$0xff] %v1538_v25  ;;  %1019 = vlog2.f32 %v369_v39  ;;  %v1548_v48 = vsub.f32 0.0, %v325_v37  ;;  %v1550_v49 = vsub.f32 0.0, %v326_v33  ;;  %v1923_v31 = vsub.f32 1.0, %v1420_v12 }
  0x68   : > { %v373_v27 = vadd.f32 1e-06, %v1921_v47  ;;  %1021 = vlog2.f32 %v370_v42  ;;  %v1554_v54 = vsub.f32 0.0, %v327_v14  ;;  %v1556_v32 = vsub.f32 0.0, %v328_v19 }
  0x69   : > { %1922 = vst [vmem:[#allocation50_spill] sm:$0xff] %v1550_v49  ;;  %v374_v53 = vadd.f32 1e-06, %v1923_v31  ;;  %v1926_v22 = vsub.f32 1.0, %v1425_v16  ;;  %1023 = vlog2.f32 %v371_v23  ;;  %v1560_v58 = vsub.f32 0.0, %v329_v24 }
  0x6a   : > { %1924 = vst [vmem:[#allocation51_spill] sm:$0xff] %v1554_v54  ;;  %1925 = vst [vmem:[#allocation52_spill] sm:$0xff] %v1556_v32  ;;  %v1928_v37 = vsub.f32 1.0, %v1427_v17  ;;  %1025 = vlog2.f32 %v372_v46  ;;  %v1566_v33 = vmul.f32 %v1450_v29, %v1404_v4  ;;  %v1929_v13 = vsub.f32 1.0, %v1429_v18 }
  0x6b   : > { %v375_v55 = vadd.f32 1e-06, %v1926_v22  ;;  %1927 = vst [vmem:[#allocation53_spill] sm:$0xff] %v1560_v58  ;;  %v1008_v63 = vpop.eup %1007  ;;  %1027 = vlog2.f32 %v373_v27  ;;  %v426_v15 = vadd.f32 1e-06, %v1396_v0  ;;  %v1573_v23 = vmul.f32 %v1453_v30, %v1406_v5 }
  0x6c   : > { %v376_v39 = vadd.f32 1e-06, %v1928_v37  ;;  %v377_v14 = vadd.f32 1e-06, %v1929_v13  ;;  %v1010_v24 = vpop.eup %1009  ;;  %1029 = vlog2.f32 %v374_v53  ;;  %v427_v19 = vadd.f32 1e-06, %v1398_v1 }
  0x6d   : > { %v428_v42 = vadd.f32 1e-06, %v1400_v2  ;;  %v429_v46 = vadd.f32 1e-06, %v1402_v3  ;;  %v1012_v47 = vpop.eup %1011  ;;  %1031 = vlog2.f32 %v375_v55  ;;  %v430_v31 = vadd.f32 1e-06, %v1404_v4 }
  0x6e   : > { %v540_v27 = vmul.f32 %v1465_v36, %v1412_v8  ;;  %v541_v22 = vmul.f32 %v1471_v40, %v1414_v9  ;;  %v1014_v37 = vpop.eup %1013  ;;  %1033 = vlog2.f32 %v376_v39  ;;  %v431_v53 = vadd.f32 1e-06, %v1406_v5 }
  0x6f   : > { %v432_v13 = vadd.f32 1e-06, %v1408_v6  ;;  %v433_v2 = vadd.f32 1e-06, %v1410_v7  ;;  %v1016_v58 = vpop.eup %1015  ;;  %1035 = vlog2.f32 %v377_v14  ;;  %v434_v55 = vadd.f32 1e-06, %v1412_v8 }
  0x70   : > { %v435_v4 = vadd.f32 1e-06, %v1414_v9  ;;  %v548_v3 = vadd.f32 %v1501_v56, %v1481_v45  ;;  %v1018_v1 = vpop.eup %1017  ;;  %v436_v0 = vadd.f32 1e-06, %v1416_v10  ;;  %v437_v39 = vadd.f32 1e-06, %v1418_v11 }
  0x71   : > { %v438_v5 = vadd.f32 1e-06, %v1420_v12  ;;  %1037 = vlog2.f32 %v426_v15  ;;  %v1020_v32 = vpop.eup %1019  ;;  %v439_v25 = vadd.f32 1e-06, %v1425_v16  ;;  %v542_v14 = vmul.f32 %v1474_v41, %v1416_v10 }
  0x72   : > { %1039 = vlog2.f32 %v427_v19  ;;  %v561_v8 = vadd.f32 %v541_v22, %v540_v27  ;;  %v1022_v9 = vpop.eup %1021  ;;  %v440_v54 = vadd.f32 1e-06, %v1427_v17  ;;  %v1598_v45 = vadd.f32 1e-06, %v1429_v18  ;;  %v1930_v22 = vld [vmem:[#allocation46_spill] sm:$0xff] }
  0x73   : > { %1041 = vlog2.f32 %v428_v42  ;;  %v1602_v56 = vmul.f32 %v1459_v34, %v1408_v6  ;;  %v1024_v15 = vpop.eup %1023  ;;  %v1606_v19 = vmul.f32 %v1462_v35, %v1410_v7  ;;  %v543_v27 = vmul.f32 %v1488_v50, %v1418_v11 }
  0x74   : > { %1043 = vlog2.f32 %v429_v46  ;;  %v549_v10 = vadd.f32 %v548_v3, %v1930_v22  ;;  %v1026_v49 = vpop.eup %1025  ;;  %v379_v41 = vmul.f32 0.6931472, %v1006_v57  ;;  %v381_v40 = vmul.f32 0.6931472, %v1008_v63 }
  0x75   : > { %1045 = vlog2.f32 %v430_v31  ;;  %v544_v42 = vmul.f32 %v1491_v51, %v1420_v12  ;;  %v1028_v6 = vpop.eup %1027  ;;  %v383_v34 = vmul.f32 0.6931472, %v1010_v24  ;;  %v385_v36 = vmul.f32 0.6931472, %v1012_v47  ;;  %v1932_v31 = vld [vmem:[#allocation48_spill] sm:$0xff] }
  0x76   : > { %1047 = vlog2.f32 %v431_v53  ;;  %v562_v46 = vadd.f32 %v561_v8, %v542_v14  ;;  %v1613_v30 = vpop.eup %1029  ;;  %v387_v7 = vmul.f32 0.6931472, %v1014_v37  ;;  %v389_v35 = vmul.f32 0.6931472, %v1016_v58  ;;  %v1931_v8 = vld [vmem:[#allocation47_spill] sm:$0xff] }
  0x77   : > { %1049 = vlog2.f32 %v432_v13  ;;  %v545_v3 = vmul.f32 %v1494_v52, %v1425_v16  ;;  %v1617_v22 = vpop.eup %1031  ;;  %v1621_v57 = vmul.f32 %v1506_v61, %v1427_v17  ;;  %v1625_v63 = vmul.f32 %v1509_v62, %v1429_v18 }
  0x78   : > { %1051 = vlog2.f32 %v433_v2  ;;  %v550_v24 = vadd.f32 %v549_v10, %v1931_v8  ;;  %v1628_v47 = vpop.eup %1033  ;;  %v391_v58 = vmul.f32 0.6931472, %v1018_v1  ;;  %v410_v37 = vmul.f32 %v379_v41, %v1932_v31 }
  0x79   : > { %v411_v53 = vmul.f32 %v381_v40, %v1526_v28  ;;  %1053 = vlog2.f32 %v434_v55  ;;  %v1632_v13 = vpop.eup %1035  ;;  %v412_v2 = vmul.f32 %v383_v34, %v1528_v38  ;;  %v1636_v14 = vmul.f32 %v385_v36, %v1530_v20 }
  0x7a   : > { %1055 = vlog2.f32 %v435_v4  ;;  %v563_v18 = vadd.f32 %v562_v46, %v543_v27  ;;  %v1638_v16 = vmul.f32 0.6931472, %v1020_v32  ;;  %v1641_v10 = vmul.f32 %v387_v7, %v1532_v59  ;;  %v1933_v59 = vld [vmem:[#allocation36_spill] sm:$0xff] }
  0x7b   : > { %v1038_v17 = vpop.eup %1037  ;;  %v1644_v1 = vmul.f32 %v389_v35, %v1534_v21  ;;  %1057 = vlog2.f32 %v436_v0  ;;  %v395_v40 = vmul.f32 0.6931472, %v1022_v9  ;;  %v551_v34 = vadd.f32 %v550_v24, %v1566_v33 }
  0x7c   : > { %v1040_v28 = vpop.eup %1039  ;;  %v443_v41 = vmul.f32 0.6931472, %v1038_v17  ;;  %1059 = vlog2.f32 %v437_v39  ;;  %v397_v38 = vmul.f32 0.6931472, %v1024_v15  ;;  %v1648_v4 = vmul.f32 %v391_v58, %v1536_v60  ;;  %v1934_v17 = vld [vmem:[#allocation37_spill] sm:$0xff]  ;;  %v1935_v15 = vld [vmem:[#allocation38_spill] sm:$0xff] }
  0x7d   : > { %v1042_v36 = vpop.eup %1041  ;;  %v445_v20 = vmul.f32 0.6931472, %v1040_v28  ;;  %1061 = vlog2.f32 %v438_v5  ;;  %v564_v21 = vadd.f32 %v563_v18, %v544_v42  ;;  %v399_v55 = vmul.f32 0.6931472, %v1026_v49  ;;  %v1936_v58 = vld [vmem:[#allocation39_spill] sm:$0xff] }
  0x7e   : > { %v1044_v32 = vpop.eup %1043  ;;  %v447_v7 = vmul.f32 0.6931472, %v1042_v36  ;;  %1063 = vlog2.f32 %v439_v25  ;;  %v474_v35 = vmul.f32 %v443_v41, %v1933_v59  ;;  %v552_v8 = vadd.f32 %v551_v34, %v1573_v23 }
  0x7f   : > { %v1046_v0 = vpop.eup %1045  ;;  %v449_v9 = vmul.f32 0.6931472, %v1044_v32  ;;  %1065 = vlog2.f32 %v440_v54  ;;  %v475_v39 = vmul.f32 %v445_v20, %v1934_v17  ;;  %v401_v24 = vmul.f32 0.6931472, %v1028_v6 }
  0x80   : > { %v1048_v33 = vpop.eup %1047  ;;  %v451_v27 = vmul.f32 0.6931472, %v1046_v0  ;;  %v476_v46 = vmul.f32 %v447_v7, %v1935_v15  ;;  %v490_v60 = vsub.f32 %v410_v37, %v474_v35  ;;  %v418_v25 = vmul.f32 %v395_v40, %v1540_v43  ;;  %v1937_v0 = vld [vmem:[#allocation40_spill] sm:$0xff] }
  0x81   : > { %v1050_v5 = vpop.eup %1049  ;;  %v477_v31 = vmul.f32 %v449_v9, %v1936_v58  ;;  %v491_v18 = vsub.f32 %v411_v53, %v475_v39  ;;  %v419_v49 = vmul.f32 %v397_v38, %v1542_v26  ;;  %v453_v54 = vmul.f32 0.6931472, %v1048_v33 }
  0x82   : > { %v1052_v42 = vpop.eup %1051  ;;  %1067 = vlog2.f32 %v1598_v45  ;;  %v492_v28 = vsub.f32 %v412_v2, %v476_v46  ;;  %v478_v36 = vmul.f32 %v451_v27, %v1450_v29  ;;  %v565_v34 = vadd.f32 %v564_v21, %v545_v3  ;;  %v1938_v21 = vld [vmem:[#allocation43_spill] sm:$0xff]  ;;  %v1940_v46 = vld [vmem:[#allocation45_spill] sm:$0xff] }
  0x83   : > { %v1054_v41 = vpop.eup %1053  ;;  %v493_v37 = vsub.f32 %v1636_v14, %v477_v31  ;;  %v506_v23 = vadd.f32 %v491_v18, %v490_v60  ;;  %v403_v43 = vmul.f32 0.6931472, %v1613_v30  ;;  %v420_v40 = vmul.f32 %v399_v55, %v1544_v44  ;;  %v1939_v44 = vld [vmem:[#allocation44_spill] sm:$0xff] }
  0x84   : > { %v1056_v6 = vpop.eup %1055  ;;  %v459_v53 = vmul.f32 0.6931472, %v1054_v41  ;;  %v553_v20 = vadd.f32 %v552_v8, %v1602_v56  ;;  %v405_v38 = vmul.f32 0.6931472, %v1617_v22  ;;  %v421_v45 = vmul.f32 %v401_v24, %v1548_v48 }
  0x85   : > { %v1058_v26 = vpop.eup %1057  ;;  %v461_v2 = vmul.f32 0.6931472, %v1056_v6  ;;  %v507_v32 = vadd.f32 %v506_v23, %v492_v28  ;;  %v455_v35 = vmul.f32 0.6931472, %v1050_v5  ;;  %v479_v3 = vmul.f32 %v453_v54, %v1937_v0  ;;  %v1941_v28 = vld [vmem:[#allocation50_spill] sm:$0xff]  ;;  %v1942_v6 = vld [vmem:[#allocation41_spill] sm:$0xff] }
  0x86   : > { %v1060_v7 = vpop.eup %1059  ;;  %v463_v14 = vmul.f32 0.6931472, %v1058_v26  ;;  %v482_v9 = vmul.f32 %v459_v53, %v1938_v21  ;;  %v494_v56 = vsub.f32 %v1641_v10, %v478_v36  ;;  %v566_v8 = vadd.f32 %v565_v34, %v1621_v57  ;;  %v1943_v34 = vld [vmem:[#allocation51_spill] sm:$0xff] }
  0x87   : > { %v1062_v30 = vpop.eup %1061  ;;  %v465_v39 = vmul.f32 0.6931472, %v1060_v7  ;;  %v483_v55 = vmul.f32 %v461_v2, %v1939_v44  ;;  %v508_v33 = vadd.f32 %v507_v32, %v493_v37  ;;  %v407_v24 = vmul.f32 0.6931472, %v1628_v47 }
  0x88   : > { %v1064_v27 = vpop.eup %1063  ;;  %v467_v22 = vmul.f32 0.6931472, %v1062_v30  ;;  %v484_v48 = vmul.f32 %v463_v14, %v1940_v46  ;;  %v498_v60 = vsub.f32 %v418_v25, %v482_v9  ;;  %v422_v41 = vmul.f32 %v403_v43, %v1941_v28  ;;  %v1944_v43 = vld [vmem:[#allocation49_spill] sm:$0xff]  ;;  %v1953_v28 = vld [vmem:[#allocation32_spill] sm:$0xff] }
  0x89   : > { %v1066_v5 = vpop.eup %1065  ;;  %v469_v31 = vmul.f32 0.6931472, %v1064_v27  ;;  %v485_v18 = vmul.f32 %v465_v39, %v1488_v50  ;;  %v499_v54 = vsub.f32 %v419_v49, %v483_v55  ;;  %v457_v23 = vmul.f32 0.6931472, %v1052_v42  ;;  %v1947_v27 = vld [vmem:[#allocation22_spill] sm:$0xff] }
  0x8a   : > { %v486_v10 = vmul.f32 %v467_v22, %v1491_v51  ;;  %v500_v36 = vsub.f32 %v420_v40, %v484_v48  ;;  %v471_v37 = vmul.f32 0.6931472, %v1066_v5  ;;  %v480_v53 = vmul.f32 %v455_v35, %v1942_v6  ;;  %v1945_v35 = vld [vmem:[#allocation52_spill] sm:$0xff]  ;;  %v1951_v5 = vld [vmem:[#allocation31_spill] sm:$0xff] }
  0x8b   : > { %v495_v25 = vsub.f32 %v1644_v1, %v479_v3  ;;  %v509_v26 = vadd.f32 %v508_v33, %v494_v56  ;;  %v423_v2 = vmul.f32 %v405_v38, %v1943_v34  ;;  %v487_v47 = vmul.f32 %v469_v31, %v1494_v52  ;;  %v1946_v1 = vld [vmem:[#allocation42_spill] sm:$0xff] }
  0x8c   : > { %v1068_v57 = vpop.eup %1067  ;;  %v501_v32 = vsub.f32 %v421_v45, %v485_v18  ;;  %v519_v7 = vadd.f32 %v499_v54, %v498_v60  ;;  %v409_v49 = vmul.f32 0.6931472, %v1632_v13  ;;  %v417_v42 = vmul.f32 %v1638_v16, %v1944_v43  ;;  %v1950_v60 = vld [vmem:[#allocation30_spill] sm:$0xff]  ;;  %v1952_v18 = vld [vmem:[#allocation24_spill] sm:$0xff] }
  0x8d   : > { %v554_v40 = vadd.f32 %v553_v20, %v1606_v19  ;;  %v567_v14 = vadd.f32 %v566_v8, %v1625_v63  ;;  %v424_v9 = vmul.f32 %v407_v24, %v1945_v35  ;;  %v481_v3 = vmul.f32 %v457_v23, %v1946_v1  ;;  %v1948_v19 = vld [vmem:[#allocation23_spill] sm:$0xff]  ;;  %v1949_v20 = vld [vmem:[#allocation53_spill] sm:$0xff] }
  0x8e   : > { %v502_v30 = vsub.f32 %v422_v41, %v486_v10  ;;  %v520_v39 = vadd.f32 %v519_v7, %v500_v36  ;;  %v473_v38 = vmul.f32 0.6931472, %v1068_v57  ;;  %v488_v55 = vmul.f32 %v471_v37, %v1506_v61  ;;  %v1954_v37 = vld [vmem:[#allocation25_spill] sm:$0xff] }
  0x8f   : > { %v496_v45 = vsub.f32 %v1648_v4, %v480_v53  ;;  %v510_v56 = vadd.f32 %v509_v26, %v495_v25  ;;  %v503_v13 = vsub.f32 %v423_v2, %v487_v47  ;;  %v574_v16 = vadd.f32 %v1933_v59, %v1947_v27  ;;  %v1955_v47 = vld [vmem:[#allocation26_spill] sm:$0xff] }
  0x90   : > { %v521_v33 = vadd.f32 %v520_v39, %v501_v32  ;;  %v575_v63 = vadd.f32 %v1934_v17, %v1948_v19  ;;  %v425_v22 = vmul.f32 %v409_v49, %v1949_v20  ;;  %v555_v48 = vrot.slane %v554_v40, 4 }
  0x91   : > { %v582_v8 = vadd.f32 %v1938_v21, %v1950_v60  ;;  %v583_v24 = vadd.f32 %v1939_v44, %v1951_v5  ;;  %v497_v31 = vsub.f32 %v417_v42, %v481_v3  ;;  %v576_v54 = vadd.f32 %v1935_v15, %v1952_v18  ;;  %v1956_v3 = vld [vmem:[#allocation27_spill] sm:$0xff] }
  0x92   : > { %v522_v4 = vadd.f32 %v521_v33, %v502_v30  ;;  %v584_v41 = vadd.f32 %v1940_v46, %v1953_v28  ;;  %v489_v23 = vmul.f32 %v473_v38, %v1509_v62  ;;  %v504_v10 = vsub.f32 %v424_v9, %v488_v55  ;;  %v1957_v38 = vld [vmem:[#allocation33_spill] sm:$0xff] }
  0x93   : > { %v511_v36 = vadd.f32 %v510_v56, %v496_v45  ;;  %v577_v53 = vadd.f32 %v1936_v58, %v1954_v37  ;;  %v585_v26 = vadd.f32 %v1488_v50, %v1418_v11  ;;  %v590_v57 = vadd.f32 %v575_v63, %v574_v16  ;;  %v1959_v16 = vld [vmem:[#allocation34_spill] sm:$0xff] }
  0x94   : > { %v523_v25 = vadd.f32 %v522_v4, %v503_v13  ;;  %v603_v34 = vadd.f32 %v583_v24, %v582_v8  ;;  %v568_v2 = vrot.slane %v567_v14, 4  ;;  %v578_v32 = vadd.f32 %v1450_v29, %v1955_v47  ;;  %v1958_v13 = vld [vmem:[#allocation28_spill] sm:$0xff] }
  0x95   : > { %v586_v7 = vadd.f32 %v1491_v51, %v1420_v12  ;;  %v591_v49 = vadd.f32 %v590_v57, %v576_v54  ;;  %v505_v42 = vsub.f32 %v425_v22, %v489_v23  ;;  %v512_v35 = vadd.f32 %v511_v36, %v497_v31  ;;  %v1960_v31 = vld [vmem:[#allocation29_spill] sm:$0xff]  ;;  %v1961_v23 = vld [vmem:[#allocation35_spill] sm:$0xff] }
  0x96   : > { %v604_v43 = vadd.f32 %v603_v34, %v584_v41  ;;  %v556_v9 = vadd.f32 %v555_v48, %v554_v40  ;;  %v579_v30 = vadd.f32 %v1937_v0, %v1956_v3  ;;  %v524_v39 = vadd.f32 %v523_v25, %v504_v10 }
  0x97   : > { %v587_v55 = vadd.f32 %v1494_v52, %v1957_v38  ;;  %v592_v45 = vadd.f32 %v591_v49, %v577_v53  ;;  %v580_v33 = vadd.f32 %v1942_v6, %v1958_v13  ;;  %v588_v63 = vadd.f32 %v1506_v61, %v1959_v16 }
  0x98   : > { %v605_v56 = vadd.f32 %v604_v43, %v585_v26  ;;  %v513_v22 = vrot.slane %v512_v35, 4  ;;  %v557_v24 = vrot.slane %v556_v9, 2  ;;  %v1718_v40 = vadd.f32 %v568_v2, %v567_v14 }
  0x99   : > { %v593_v20 = vadd.f32 %v592_v45, %v578_v32  ;;  %v525_v48 = vadd.f32 %v524_v39, %v505_v42  ;;  %v581_v4 = vadd.f32 %v1946_v1, %v1960_v31  ;;  %v589_v10 = vadd.f32 %v1509_v62, %v1961_v23 }
  0x9a   : > { %v606_v8 = vadd.f32 %v605_v56, %v586_v7  ;;  %v616_v36 = vand.u32 2147483647, %v1947_v27  ;;  %v617_v53 = vand.u32 2147483647, %v1948_v19  ;;  %v618_v25 = vand.u32 2147483647, %v1952_v18 }
  0x9b   : > { %v594_v54 = vadd.f32 %v593_v20, %v579_v30  ;;  %v619_v14 = vand.u32 2147483647, %v1954_v37  ;;  %v620_v34 = vand.u32 2147483647, %v1955_v47  ;;  %v621_v2 = vand.u32 2147483647, %v1956_v3 }
  0x9c   : > { %v607_v41 = vadd.f32 %v606_v8, %v587_v55  ;;  %v622_v32 = vand.u32 2147483647, %v1958_v13  ;;  %v623_v7 = vand.u32 2147483647, %v1960_v31  ;;  %v526_v49 = vrot.slane %v525_v48, 4 }
  0x9d   : > { %v595_v26 = vadd.f32 %v594_v54, %v580_v33  ;;  %v570_v43 = vrot.slane %v1718_v40, 2  ;;  %v624_v27 = vand.u32 2147483647, %v1950_v60  ;;  %v625_v19 = vand.u32 2147483647, %v1951_v5 }
  0x9e   : > { %v608_v57 = vadd.f32 %v607_v41, %v588_v63  ;;  %v1735_v18 = vadd.f32 %v557_v24, %v556_v9  ;;  %v626_v42 = vand.u32 2147483647, %v1953_v28  ;;  %v632_v37 = vand.u32 2147483647, %v1933_v59 }
  0x9f   : > { %v633_v47 = vand.u32 2147483647, %v1934_v17  ;;  %v596_v3 = vadd.f32 %v595_v26, %v581_v4  ;;  %v627_v39 = vand.u32 2147483647, %v1418_v11  ;;  %v634_v55 = vand.u32 2147483647, %v1935_v15 }
  0xa0   : > { %v609_v30 = vadd.f32 %v608_v57, %v589_v10  ;;  %v514_v45 = vadd.f32 %v513_v22, %v512_v35  ;;  %v640_v56 = vand.u32 2147483647, %v1938_v21  ;;  %v641_v60 = vand.u32 2147483647, %v1939_v44 }
  0xa1   : > { %v642_v5 = vand.u32 2147483647, %v1940_v46  ;;  %v527_v9 = vadd.f32 %v526_v49, %v525_v48  ;;  %v628_v28 = vand.u32 2147483647, %v1420_v12  ;;  %v629_v59 = vand.u32 2147483647, %v1957_v38 }
  0xa2   : > { %v630_v17 = vand.u32 2147483647, %v1959_v16  ;;  %v635_v13 = vand.u32 2147483647, %v1936_v58  ;;  %v643_v11 = vand.u32 2147483647, %v1488_v50  ;;  %v648_v33 = vadd.f32 %v632_v37, %v616_v36 }
  0xa3   : > { %v649_v15 = vadd.f32 %v633_v47, %v617_v53  ;;  %v597_v35 = vrot.slane %v596_v3, 4  ;;  %v610_v63 = vrot.slane %v609_v30, 4  ;;  %v636_v21 = vand.u32 2147483647, %v1450_v29 }
  0xa4   : > { %v644_v44 = vand.u32 2147483647, %v1491_v51  ;;  %v650_v46 = vadd.f32 %v634_v55, %v618_v25  ;;  %v656_v20 = vadd.f32 %v640_v56, %v624_v27  ;;  %v657_v8 = vadd.f32 %v641_v60, %v625_v19 }
  0xa5   : > { %v658_v12 = vadd.f32 %v642_v5, %v626_v42  ;;  %v515_v22 = vrot.slane %v514_v45, 2  ;;  %v528_v38 = vrot.slane %v527_v9, 2  ;;  %v637_v16 = vand.u32 2147483647, %v1937_v0 }
  0xa6   : > { %v645_v58 = vand.u32 2147483647, %v1494_v52  ;;  %v651_v24 = vadd.f32 %v635_v13, %v619_v14  ;;  %v659_v50 = vadd.f32 %v643_v11, %v627_v39  ;;  %v664_v48 = vadd.f32 %v649_v15, %v648_v33 }
  0xa7   : > { %v677_v4 = vadd.f32 %v657_v8, %v656_v20  ;;  %v598_v54 = vadd.f32 %v597_v35, %v596_v3  ;;  %v611_v41 = vadd.f32 %v610_v63, %v609_v30  ;;  %v638_v29 = vand.u32 2147483647, %v1942_v6 }
  0xa8   : > { %v646_v51 = vand.u32 2147483647, %v1506_v61  ;;  %v652_v10 = vadd.f32 %v636_v21, %v620_v34  ;;  %v660_v36 = vadd.f32 %v644_v44, %v628_v28  ;;  %v665_v53 = vadd.f32 %v664_v48, %v650_v46 }
  0xa9   : > { %v678_v25 = vadd.f32 %v677_v4, %v658_v12  ;;  %v571_v26 = vadd.f32 %v570_v43, %v1718_v40  ;;  %v631_v0 = vand.u32 2147483647, %v1961_v23  ;;  %v639_v52 = vand.u32 2147483647, %v1946_v1 }
  0xaa   : > { %v647_v57 = vand.u32 2147483647, %v1509_v62  ;;  %v653_v14 = vadd.f32 %v637_v16, %v621_v2  ;;  %v661_v49 = vadd.f32 %v645_v58, %v629_v59  ;;  %v666_v27 = vadd.f32 %v665_v53, %v651_v24 }
  0xab   : > { %v679_v19 = vadd.f32 %v678_v25, %v659_v50  ;;  %v516_v42 = vadd.f32 %v515_v22, %v514_v45  ;;  %v529_v6 = vadd.f32 %v528_v38, %v527_v9  ;;  %v599_v37 = vrot.slane %v598_v54, 2 }
  0xac   : > { %v612_v61 = vrot.slane %v611_v41, 2  ;;  %v654_v34 = vadd.f32 %v638_v29, %v622_v32  ;;  %v662_v47 = vadd.f32 %v646_v51, %v630_v17  ;;  %v667_v3 = vadd.f32 %v666_v27, %v652_v10 }
  0xad   : > { %v680_v30 = vadd.f32 %v679_v19, %v660_v36  ;;  %v655_v40 = vadd.f32 %v639_v52, %v623_v7  ;;  %v663_v23 = vadd.f32 %v647_v57, %v631_v0  ;;  %v559_v62 = vrot.slane %v1735_v18, 1 }
  0xae   : > { %v668_v43 = vadd.f32 %v667_v3, %v653_v14  ;;  %v572_v2 = vrot.slane %v571_v26, 1  ;;  %v600_v39 = vadd.f32 %v599_v37, %v598_v54  ;;  %v613_v55 = vadd.f32 %v612_v61, %v611_v41 }
  0xaf   : > { %v681_v1 = vadd.f32 %v680_v30, %v661_v49  ;;  %v517_v56 = vrot.slane %v516_v42, 1  ;;  %v530_v45 = vrot.slane %v529_v6, 1  ;;  %v560_v28 = vadd.f32 %v559_v62, %v1735_v18 }
  0xb0   : > { %v669_v60 = vadd.f32 %v668_v43, %v654_v34  ;;  %v573_v59 = vadd.f32 %v572_v2, %v571_v26  ;;  %v601_v17 = vrot.slane %v600_v39, 1  ;;  %v614_v31 = vrot.slane %v613_v55, 1 }
  0xb1   : > { %v682_v5 = vadd.f32 %v681_v1, %v662_v47  ;;  %v518_v7 = vadd.f32 %v517_v56, %v516_v42  ;;  %v531_v13 = vadd.f32 %v530_v45, %v529_v6  ;;  %vm710_vm3 = vcmask 1041408  }
  0xb2   : > { %v670_v9 = vadd.f32 %v669_v60, %v655_v40  ;;  %v602_v63 = vadd.f32 %v601_v17, %v600_v39  ;;  %v615_v21 = vadd.f32 %v614_v31, %v613_v55  ;;  %v698_v18 = vsel %vm697_vm1, %v573_v59, %v560_v28 }
  0xb3   : > { %v683_v32 = vadd.f32 %v682_v5, %v663_v23  ;;  %v693_v20 = vsel %vm692_vm0, %v531_v13, %v518_v7  ;;  %vm712_vm4 = vcmask 1043456   ;;  %vm707_vm5 = vcmask 1047559  }
  0xb4   : > { %v671_v11 = vrot.slane %v670_v9, 4  ;;  %v703_v22 = vsel %vm702_vm2, %v615_v21, %v602_v63  ;;  %v711_v38 = vsel %vm710_vm3, %v693_v20, %v698_v18  ;;  %vm714_vm6 = vcmask 1045504  }
  0xb5   : > { %v684_v33 = vrot.slane %v683_v32, 4  ;;  %v713_v48 = vsel %vm712_vm4, %v711_v38, %v703_v22 }
  0xb6   : > { %v672_v15 = vadd.f32 %v671_v11, %v670_v9 }
  0xb7   : > { %v685_v35 = vadd.f32 %v684_v33, %v683_v32 }
  0xb8   : > { %v673_v44 = vrot.slane %v672_v15, 2 }
  0xb9   : > { %v686_v46 = vrot.slane %v685_v35, 2 }
  0xba   : > { %v674_v8 = vadd.f32 %v673_v44, %v672_v15 }
  0xbb   : > { %v687_v12 = vadd.f32 %v686_v46, %v685_v35 }
  0xbc   : > { %v675_v16 = vrot.slane %v674_v8, 1  ;;  %719 = sbr.rel (%p874_p5) target bundleno = 196 (0xc4), region = 40 }
  0xbd   : > { %v688_v58 = vrot.slane %v687_v12, 1 }
  0xbe   : > { %v676_v24 = vadd.f32 %v675_v16, %v674_v8 }
  0xbf   : > { %v689_v50 = vadd.f32 %v688_v58, %v687_v12 }
  0xc1   : > { %v708_v4 = vsel %vm707_vm5, %v689_v50, %v676_v24 }
  0xc2   : > { %v715_v54 = vsel %vm714_vm6, %v713_v48, %v708_v4 }
  0xc3   : > { %720 = vst [vmem:[%s275_s28] sm:$0xff] %v715_v54 }
  0xc4 PF: > { %p875_p7 = scmp.le.s32.totalorder %s1179_s15, 0 }
  0xc6   : > { %724 = sbr.rel (%p875_p7) target bundleno = 206 (0xce), region = 44 }
  0xca   : > { %v725_v41 = vld [vmem:[%s275_s28] sm:$0xff] (!%p875_p7) }
  0xcb   : > { %v726_v29 = vadd.f32 (!%p875_p7), %v725_v41, %v715_v54 }
  0xcd   : > { %727 = vst [vmem:[%s275_s28] sm:$0xff] %v726_v29 }
  0xce PF: > { %s877_s3 = sshll.u32 %s1183_s16, 7  ;;  %s742_s5 = sshll.u32 %s275_s28, 4  ;;  %s743_s5 = int_to_ptr.vmem [resolvable:$true] %s742_s5 }
  0xcf   : > { %s1771_s24 = scalar_lea.hbm %s1831_s2, %s877_s3  ;;  %s729_s18 = scalar_lea.sflag [#allocation4], %s273_s7 }
  0xd0   : > { %s1069_s22 = scalar_lea.vmem %s743_s5, 128  ;;  %s1207_s15 = smov [#allocation7]  }
  0xd1   : > { %p1070_p8 = scmp.ne.s32.totalorder %s743_s5, %s1069_s22  ;;  %s1073_s17 = sshll.u32 %s1207_s15, 4  ;;  %s1074_s17 = int_to_ptr.vmem [resolvable:$false] %s1073_s17 }
  0xd2   : > { %s1075_s25 = scalar_lea.vmem %s1074_s17, 256  ;;  %p1076_p11 = scmp.lt.s32.totalorder %s743_s5, %s1074_s17 }
  0xd3   : > { %p1071_p9 = pnand %p1070_p8, %p1316_p12  ;;  %p1077_p13 = scmp.lt.s32.totalorder %s1075_s25, %s1069_s22 }
  0xd5   : > { %p1072_p10 = pneg %p1071_p9  ;;  %p1078_p0 = por %p1077_p13, %p1076_p11 }
  0xd7   : > { %p1079_p2 = pnand %p1078_p0, %p1072_p10 }
  0xd9   : > { %1082 = shalt.err (!%p1079_p2)
}
  0xda   : > { %s1083_s16 = scalar_lea.hbm %s1771_s24, 128  ;;  %s1087_s4 = scalar_lea.hbm %s1831_s2, 256 }
  0xdb   : > { %p1084_p3 = scmp.ne.s32.totalorder %s1771_s24, %s1083_s16  ;;  %p1088_p5 = scmp.lt.u32.totalorder %s1771_s24, %s1831_s2 }
  0xdc   : > { %p1089_p7 = scmp.lt.u32.totalorder %s1087_s4, %s1083_s16  ;;  %p1091_p9 = scmp.lt.u32.totalorder %s1083_s16, %s1771_s24 }
  0xdd   : > { %p1085_p4 = pnand %p1084_p3, %p1316_p12 }
  0xde   : > { %p1090_p8 = por %p1089_p7, %p1088_p5 }
  0xdf   : > { %p1086_p6 = pneg %p1085_p4 }
  0xe0   : > { %p1092_p10 = por %p1091_p9, %p1090_p8 }
  0xe2   : > { %p1093_p11 = pnand %p1092_p10, %p1086_p6 }
  0xe4   : > { %1096 = shalt.err (!%p1093_p11)
}
  0xe5   : > { %900 = dma.vmem_to_hbm [thread:$0]  (%p1316_p12), %s743_s5, 128, %s1771_s24, %s729_s18  }
  0xe6 PF: > { %p906_p13 = scmp.ge.s32.totalorder %s1195_s19, 2  ;;  %s754_s7 = sand.u32 1, %s1155_s9  }
  0xe7   : > { %s755_s23 = scalar_lea.sflag [#allocation4], %s754_s7 }
  0xe8   : > { %p903_p0 = pnand %p906_p13, %p1324_p1 }
  0xea   : > { %1150 = dma.done.wait (!%p903_p0), %s755_s23, 128  }
  0xeb   : > { %1152 = vsyncadd (!%p903_p0), %s755_s23, 4294967168  ;;  %s21_s19 = sadd.s32 1, %s1195_s19   ;;  %s1962_s8 = sld [smem:[#allocation21_spill]] }
  0xec   : > { %p18_p2 = scmp.ge.s32.totalorder %s21_s19, 6   ;;  %s1963_s15 = sld [smem:[#allocation17_spill]] }
  0xed   : > { %s1964_s16 = sld [smem:[#allocation18_spill]]  ;;  %s1965_s17 = sld [smem:[#allocation19_spill]] }
  0xee   : > { %s1966_s18 = sld [smem:[#allocation20_spill]]  ;;  %s1967_s9 = smov %s1159_s10 }
  0xef   : > { %s1968_s10 = smov %s1163_s11  ;;  %s1969_s11 = smov %s1311_s6 }
  0xf0   : > { %s1970_s12 = smov %s1171_s13  ;;  %s1971_s13 = smov %s1175_s14 }
  0xf1   : > { %s1972_s14 = smov %s1962_s8  ;;  %20 = sbr.rel (!%p18_p2) target bundleno = 11 (0xb), region = 104 }
  0xf8   :  { %760 = vsyncpa [#allocation3], 1 }
  0xf9   :  { %762 = vsyncpa [#allocation3 + $0x1], 1 }
  0xfa   :  { %763 = vsyncpa [#allocation6], 1 }
  0xfb   :  { %765 = vsyncpa [#allocation6 + $0x1], 1 }
  0xfc   :  { %766 = vsyncpa [#allocation4], 1 }
  0xfd   :  { %768 = vsyncpa [#allocation4 + $0x1], 1 }

</bundles_post_ra>
